<compile_context>
chip_gen: v7x
topology: tpu7x:2x2x1
jax: 0.10.0
libtpu: 0.0.40
codegen_flags: <defaults>
</compile_context>

<pallas_src>
import math

import numpy as np
import jax
import jax.numpy as jnp
from jax.experimental import pallas as pl
from jax.experimental.pallas import tpu as pltpu


# ---------------------------------------------------------------------------
# Kernels
# ---------------------------------------------------------------------------

def _hbm_copy_kernel(x_hbm_ref, o_hbm_ref, sem):
    """forward_single == identity: materialize the output with one HBM->HBM DMA."""
    cp = pltpu.make_async_copy(x_hbm_ref, o_hbm_ref, sem)
    cp.start()
    cp.wait()


def _identity_block_kernel(x_ref, o_ref):
    # TODO(synk): forward_single is abstract (raises NotImplementedError) in the
    # PyTorch base class; identity is the placeholder.  Real per-frame compute on
    # the lane-dense (rows, lanes) VMEM block drops in here.
    o_ref[...] = x_ref[...]


# ---------------------------------------------------------------------------
# Tiling helpers
# ---------------------------------------------------------------------------

def _sublane_multiple(itemsize):
    """Packed sublane granularity: 8 for 4-byte, 16 for 2-byte, 32 for 1-byte."""
    return max(8, 8 * (4 // max(1, int(itemsize))))


def _lane_dense_view(shape):
    """(rows, lanes) 2-D view of the flat buffer with lanes a large multiple of
    128 when possible (unmasked, lane-dense vector stores)."""
    total = math.prod(shape)
    for lanes in (4096, 2048, 1024, 512, 256, 128):
        if total % lanes == 0:
            return total // lanes, lanes
    # Fallback: frames x features view; lane tiling below still uses 128-multiples.
    n = shape[0]
    return n, total // n


def _pick_tiles(rows, cols, itemsize, *, target_bytes=4 << 20, min_row_blocks=2):
    """Block shape (tr, tc) for the tiled copy."""
    sub = _sublane_multiple(itemsize)

    # Lane (minor) tile: full extent unless even a minimum-height block would
    # exceed the byte budget (huge per-frame feature size -> v7x VMEM safety).
    if cols <= 128 or sub * cols * itemsize <= target_bytes:
        tc = cols
    else:
        tc = (target_bytes // (sub * itemsize)) // 128 * 128
        tc = int(max(128, min(tc, (cols // 128) * 128)))

    # Sublane (major) tile.
    if rows <= sub:
        return rows, tc                       # single full-extent row block
    tr_budget = max(sub, (target_bytes // (tc * itemsize)) // sub * sub)
    # Keep at least `min_row_blocks` row blocks so both v7x TensorCores get work.
    tr_split = max(sub, (pl.cdiv(rows, min_row_blocks) // sub) * sub)
    tr = int(min(tr_budget, tr_split, (rows // sub) * sub))
    # Prefer a row tile that divides `rows` (no masked partial trailing block).
    cand = tr
    while cand >= sub:
        if rows % cand == 0:
            return cand, tc
        cand -= sub
    return tr, tc


# ---------------------------------------------------------------------------
# Wrappers
# ---------------------------------------------------------------------------

def _identity_copy_dma(x):
    """Single HBM->HBM DMA copy; no VMEM staging, no grid-step overhead."""
    itemsize = jnp.dtype(x.dtype).itemsize
    return pl.pallas_call(
        _hbm_copy_kernel,
        out_shape=jax.ShapeDtypeStruct(x.shape, x.dtype),
        in_specs=[pl.BlockSpec(memory_space=pl.ANY)],
        out_specs=pl.BlockSpec(memory_space=pl.ANY),
        scratch_shapes=[pltpu.SemaphoreType.DMA],
        cost_estimate=pl.CostEstimate(
            flops=0, transcendentals=0, bytes_accessed=2 * x.size * itemsize),
    )(x)


def _identity_copy_vmem(x):
    """Lane-dense tiled HBM->VMEM->HBM copy (slot for a real forward_single)."""
    shape, dtype = x.shape, x.dtype
    itemsize = jnp.dtype(dtype).itemsize
    rows, cols = _lane_dense_view(shape)
    tr, tc = _pick_tiles(rows, cols, itemsize)

    block_bytes = tr * tc * itemsize
    # 1 input + 1 output, double-buffered, plus headroom; stay under v7x's
    # 64 MiB physical VMEM per TensorCore (v5e/v6e have 128 MiB physical).
    vmem_limit = int(min(60 << 20, max(32 << 20, 4 * block_bytes + (8 << 20))))

    x2 = x.reshape(rows, cols)
    out2 = pl.pallas_call(
        _identity_block_kernel,
        out_shape=jax.ShapeDtypeStruct((rows, cols), dtype),
        grid=(pl.cdiv(rows, tr), pl.cdiv(cols, tc)),
        in_specs=[pl.BlockSpec((tr, tc), lambda i, j: (i, j))],
        out_specs=pl.BlockSpec((tr, tc), lambda i, j: (i, j)),
        compiler_params=pltpu.CompilerParams(
            dimension_semantics=("parallel", "parallel"),
            vmem_limit_bytes=vmem_limit),
        cost_estimate=pl.CostEstimate(
            flops=0, transcendentals=0, bytes_accessed=2 * x.size * itemsize),
    )(x2)
    return out2.reshape(shape)


def temporal_forward(x, seq_lens, *, materialize="dma"):
    """Pallas implementation of Temporal.forward.

    Args:
      x:           [N, ...feature dims...] with N == sum(seq_lens).
      seq_lens:    python list/tuple of per-sample temporal lengths.
      materialize: multi-segment (torch.cat) path with identity forward_single:
                     "none" -> return x (zero cost),
                     "dma"  -> single HBM->HBM DMA copy (default),
                     "vmem" -> lane-dense tiled VMEM-staged copy.

    Returns:
      (out, new_seq_lens), matching the PyTorch module.
    """
    seq_lens = [int(l) for l in seq_lens]
    n = x.shape[0]
    assert sum(seq_lens) == n, "seq_lens must sum to the leading (frame) dim"

    # Identity forward_single keeps every segment's length.
    new_seq_lens = list(seq_lens)

    if len(seq_lens) == 1:
        # "Option for batch_size = 1": forward_single(x) is returned directly.
        return x, new_seq_lens
    if x.size == 0 or materialize == "none":
        # Segments are already contiguous along dim 0; identity-cat == x.
        return x, new_seq_lens
    if materialize == "dma":
        return _identity_copy_dma(x), new_seq_lens
    if materialize == "vmem":
        return _identity_copy_vmem(x), new_seq_lens
    raise ValueError(f"unknown materialize mode: {materialize!r}")


# ---------------------------------------------------------------------------
# Self-test
# ---------------------------------------------------------------------------

if __name__ == "__main__":
    key0, key1 = jax.random.split(jax.random.PRNGKey(0))
    C, H, W = 4, 16, 16

    # --- Multi-segment path, default single HBM->HBM DMA materialization ------
    seq_lens = [3, 5, 11]
    N = sum(seq_lens)                       # 19 frames
    x = jax.random.normal(key0, (N, C, H, W), dtype=jnp.float32)
    ref = np.asarray(x)

    out, new_lens = temporal_forward(x, seq_lens)
    out = jax.block_until_ready(out)
    np.testing.assert_allclose(np.asarray(out), ref, rtol=0, atol=0)
    assert new_lens == seq_lens

    # --- Lane-dense tiled VMEM path (structural forward_single slot) ----------
    out_v, lens_v = temporal_forward(x, seq_lens, materialize="vmem")
    out_v = jax.block_until_ready(out_v)
    np.testing.assert_allclose(np.asarray(out_v), ref, rtol=0, atol=0)
    assert lens_v == seq_lens

    # --- batch_size == 1 branch (kernel-free passthrough, per the module) -----
    out1, lens1 = temporal_forward(x, [N])
    out1 = jax.block_until_ready(out1)
    np.testing.assert_allclose(np.asarray(out1), ref, rtol=0, atol=0)
    assert lens1 == [N]

    # --- bf16 input whose flat size is not a multiple of 128 (fallback view) --
    seq_lens2 = [7, 5]
    x2 = jax.random.normal(key1, (sum(seq_lens2), 3, 10, 10), dtype=jnp.bfloat16)
    out2, lens2 = temporal_forward(x2, seq_lens2, materialize="vmem")
    out2 = jax.block_until_ready(out2)
    assert bool(jnp.all(out2 == x2))
    assert lens2 == seq_lens2

    print("KERNEL_OK")
</pallas_src>

<mosaic_0001>
module attributes {stable_mosaic.version = 11 : i64} {
  func.func @_hbm_copy_kernel(%arg0: memref<19x4x16x16xf32, #tpu.memory_space<any>>, %arg1: memref<19x4x16x16xf32, #tpu.memory_space<any>>, %arg2: memref<!tpu.dma_semaphore, #tpu.memory_space<semaphore_mem>>) attributes {dimension_semantics = [], scalar_prefetch = 0 : i64, scratch_operands = 1 : i64, tpu.core_type = #tpu.core_type<tc>} {
    tpu.enqueue_dma source(%arg0 : memref<19x4x16x16xf32, #tpu.memory_space<any>>) target(%arg1 : memref<19x4x16x16xf32, #tpu.memory_space<any>>) target_semaphore(%arg2 : memref<!tpu.dma_semaphore, #tpu.memory_space<semaphore_mem>>)
    tpu.wait_dma2 semaphore(%arg2 : memref<!tpu.dma_semaphore, #tpu.memory_space<semaphore_mem>>) src(%arg0 : memref<19x4x16x16xf32, #tpu.memory_space<any>>) dst(%arg1 : memref<19x4x16x16xf32, #tpu.memory_space<any>>)
    return
  }
}

</mosaic_0001>

<bundles_post_ra>
// kernel: tpu_custom_call.1
= control target key start
LH: loop header
LB: loop body
LE: loop exit
PB: predicated region body
PF: predicated region fallthrough
CT: control target
= control target key end

     0   :  { %s1294_s0 = inlined_call_operand.vmem [shape: f32[19,4,16,16], index: 0, kind: input, shape index: {}]   ;;  %s1295_s1 = inlined_call_operand.vmem [shape: f32[19,4,16,16], index: 1, kind: output, shape index: {}]  }
   0x1   :  { %v38_v0 = vld [vmem:[%s1294_s0] sm:$0xff]  ;;  %v40_v1 = vld [vmem:[%s1294_s0 + $0x8] sm:$0xff]  ;;  %v42_v2 = vld [vmem:[%s1294_s0 + $0x10] sm:$0xff] }
   0x2   :  { %39 = vst [vmem:[%s1295_s1] sm:$0xff] %v38_v0  ;;  %41 = vst [vmem:[%s1295_s1 + $0x8] sm:$0xff] %v40_v1  ;;  %v44_v3 = vld [vmem:[%s1294_s0 + $0x18] sm:$0xff]  ;;  %v46_v4 = vld [vmem:[%s1294_s0 + $0x20] sm:$0xff] }
   0x3   :  { %43 = vst [vmem:[%s1295_s1 + $0x10] sm:$0xff] %v42_v2  ;;  %v48_v5 = vld [vmem:[%s1294_s0 + $0x28] sm:$0xff]  ;;  %45 = vst [vmem:[%s1295_s1 + $0x18] sm:$0xff] %v44_v3  ;;  %v50_v6 = vld [vmem:[%s1294_s0 + $0x30] sm:$0xff] }
   0x4   :  { %47 = vst [vmem:[%s1295_s1 + $0x20] sm:$0xff] %v46_v4  ;;  %49 = vst [vmem:[%s1295_s1 + $0x28] sm:$0xff] %v48_v5  ;;  %v52_v7 = vld [vmem:[%s1294_s0 + $0x38] sm:$0xff]  ;;  %v54_v8 = vld [vmem:[%s1294_s0 + $0x40] sm:$0xff] }
   0x5   :  { %51 = vst [vmem:[%s1295_s1 + $0x30] sm:$0xff] %v50_v6  ;;  %53 = vst [vmem:[%s1295_s1 + $0x38] sm:$0xff] %v52_v7  ;;  %v56_v9 = vld [vmem:[%s1294_s0 + $0x48] sm:$0xff]  ;;  %v58_v10 = vld [vmem:[%s1294_s0 + $0x50] sm:$0xff] }
   0x6   :  { %55 = vst [vmem:[%s1295_s1 + $0x40] sm:$0xff] %v54_v8  ;;  %v60_v11 = vld [vmem:[%s1294_s0 + $0x58] sm:$0xff]  ;;  %57 = vst [vmem:[%s1295_s1 + $0x48] sm:$0xff] %v56_v9  ;;  %v62_v12 = vld [vmem:[%s1294_s0 + $0x60] sm:$0xff] }
   0x7   :  { %59 = vst [vmem:[%s1295_s1 + $0x50] sm:$0xff] %v58_v10  ;;  %61 = vst [vmem:[%s1295_s1 + $0x58] sm:$0xff] %v60_v11  ;;  %v64_v13 = vld [vmem:[%s1294_s0 + $0x68] sm:$0xff]  ;;  %v66_v14 = vld [vmem:[%s1294_s0 + $0x70] sm:$0xff] }
   0x8   :  { %63 = vst [vmem:[%s1295_s1 + $0x60] sm:$0xff] %v62_v12  ;;  %65 = vst [vmem:[%s1295_s1 + $0x68] sm:$0xff] %v64_v13  ;;  %v68_v15 = vld [vmem:[%s1294_s0 + $0x78] sm:$0xff]  ;;  %v70_v16 = vld [vmem:[%s1294_s0 + $0x80] sm:$0xff] }
   0x9   :  { %67 = vst [vmem:[%s1295_s1 + $0x70] sm:$0xff] %v66_v14  ;;  %v72_v17 = vld [vmem:[%s1294_s0 + $0x88] sm:$0xff]  ;;  %69 = vst [vmem:[%s1295_s1 + $0x78] sm:$0xff] %v68_v15  ;;  %v74_v18 = vld [vmem:[%s1294_s0 + $0x90] sm:$0xff] }
   0xa   :  { %71 = vst [vmem:[%s1295_s1 + $0x80] sm:$0xff] %v70_v16  ;;  %73 = vst [vmem:[%s1295_s1 + $0x88] sm:$0xff] %v72_v17  ;;  %v76_v19 = vld [vmem:[%s1294_s0 + $0x98] sm:$0xff]  ;;  %v78_v20 = vld [vmem:[%s1294_s0 + $0xa0] sm:$0xff] }
   0xb   :  { %75 = vst [vmem:[%s1295_s1 + $0x90] sm:$0xff] %v74_v18  ;;  %77 = vst [vmem:[%s1295_s1 + $0x98] sm:$0xff] %v76_v19  ;;  %v80_v21 = vld [vmem:[%s1294_s0 + $0xa8] sm:$0xff]  ;;  %v82_v22 = vld [vmem:[%s1294_s0 + $0xb0] sm:$0xff] }
   0xc   :  { %79 = vst [vmem:[%s1295_s1 + $0xa0] sm:$0xff] %v78_v20  ;;  %v84_v23 = vld [vmem:[%s1294_s0 + $0xb8] sm:$0xff]  ;;  %81 = vst [vmem:[%s1295_s1 + $0xa8] sm:$0xff] %v80_v21  ;;  %v86_v24 = vld [vmem:[%s1294_s0 + $0xc0] sm:$0xff] }
   0xd   :  { %83 = vst [vmem:[%s1295_s1 + $0xb0] sm:$0xff] %v82_v22  ;;  %85 = vst [vmem:[%s1295_s1 + $0xb8] sm:$0xff] %v84_v23  ;;  %v88_v25 = vld [vmem:[%s1294_s0 + $0xc8] sm:$0xff]  ;;  %v90_v26 = vld [vmem:[%s1294_s0 + $0xd0] sm:$0xff] }
   0xe   :  { %87 = vst [vmem:[%s1295_s1 + $0xc0] sm:$0xff] %v86_v24  ;;  %89 = vst [vmem:[%s1295_s1 + $0xc8] sm:$0xff] %v88_v25  ;;  %v92_v27 = vld [vmem:[%s1294_s0 + $0xd8] sm:$0xff]  ;;  %v94_v28 = vld [vmem:[%s1294_s0 + $0xe0] sm:$0xff] }
   0xf   :  { %91 = vst [vmem:[%s1295_s1 + $0xd0] sm:$0xff] %v90_v26  ;;  %v96_v29 = vld [vmem:[%s1294_s0 + $0xe8] sm:$0xff]  ;;  %93 = vst [vmem:[%s1295_s1 + $0xd8] sm:$0xff] %v92_v27  ;;  %v98_v30 = vld [vmem:[%s1294_s0 + $0xf0] sm:$0xff] }
  0x10   :  { %95 = vst [vmem:[%s1295_s1 + $0xe0] sm:$0xff] %v94_v28  ;;  %97 = vst [vmem:[%s1295_s1 + $0xe8] sm:$0xff] %v96_v29  ;;  %v100_v31 = vld [vmem:[%s1294_s0 + $0xf8] sm:$0xff]  ;;  %v102_v32 = vld [vmem:[%s1294_s0 + $0x100] sm:$0xff] }
  0x11   :  { %99 = vst [vmem:[%s1295_s1 + $0xf0] sm:$0xff] %v98_v30  ;;  %101 = vst [vmem:[%s1295_s1 + $0xf8] sm:$0xff] %v100_v31  ;;  %v104_v33 = vld [vmem:[%s1294_s0 + $0x108] sm:$0xff]  ;;  %v106_v34 = vld [vmem:[%s1294_s0 + $0x110] sm:$0xff] }
  0x12   :  { %103 = vst [vmem:[%s1295_s1 + $0x100] sm:$0xff] %v102_v32  ;;  %v108_v35 = vld [vmem:[%s1294_s0 + $0x118] sm:$0xff]  ;;  %105 = vst [vmem:[%s1295_s1 + $0x108] sm:$0xff] %v104_v33  ;;  %v110_v36 = vld [vmem:[%s1294_s0 + $0x120] sm:$0xff] }
  0x13   :  { %107 = vst [vmem:[%s1295_s1 + $0x110] sm:$0xff] %v106_v34  ;;  %109 = vst [vmem:[%s1295_s1 + $0x118] sm:$0xff] %v108_v35  ;;  %v112_v37 = vld [vmem:[%s1294_s0 + $0x128] sm:$0xff]  ;;  %v114_v38 = vld [vmem:[%s1294_s0 + $0x130] sm:$0xff] }
  0x14   :  { %111 = vst [vmem:[%s1295_s1 + $0x120] sm:$0xff] %v110_v36  ;;  %113 = vst [vmem:[%s1295_s1 + $0x128] sm:$0xff] %v112_v37  ;;  %v116_v39 = vld [vmem:[%s1294_s0 + $0x138] sm:$0xff]  ;;  %v118_v40 = vld [vmem:[%s1294_s0 + $0x140] sm:$0xff] }
  0x15   :  { %115 = vst [vmem:[%s1295_s1 + $0x130] sm:$0xff] %v114_v38  ;;  %v120_v41 = vld [vmem:[%s1294_s0 + $0x148] sm:$0xff]  ;;  %117 = vst [vmem:[%s1295_s1 + $0x138] sm:$0xff] %v116_v39  ;;  %v122_v42 = vld [vmem:[%s1294_s0 + $0x150] sm:$0xff] }
  0x16   :  { %119 = vst [vmem:[%s1295_s1 + $0x140] sm:$0xff] %v118_v40  ;;  %121 = vst [vmem:[%s1295_s1 + $0x148] sm:$0xff] %v120_v41  ;;  %v124_v43 = vld [vmem:[%s1294_s0 + $0x158] sm:$0xff]  ;;  %v126_v44 = vld [vmem:[%s1294_s0 + $0x160] sm:$0xff] }
  0x17   :  { %123 = vst [vmem:[%s1295_s1 + $0x150] sm:$0xff] %v122_v42  ;;  %125 = vst [vmem:[%s1295_s1 + $0x158] sm:$0xff] %v124_v43  ;;  %v128_v45 = vld [vmem:[%s1294_s0 + $0x168] sm:$0xff]  ;;  %v130_v46 = vld [vmem:[%s1294_s0 + $0x170] sm:$0xff] }
  0x18   :  { %127 = vst [vmem:[%s1295_s1 + $0x160] sm:$0xff] %v126_v44  ;;  %v132_v47 = vld [vmem:[%s1294_s0 + $0x178] sm:$0xff]  ;;  %129 = vst [vmem:[%s1295_s1 + $0x168] sm:$0xff] %v128_v45  ;;  %v134_v48 = vld [vmem:[%s1294_s0 + $0x180] sm:$0xff] }
  0x19   :  { %131 = vst [vmem:[%s1295_s1 + $0x170] sm:$0xff] %v130_v46  ;;  %133 = vst [vmem:[%s1295_s1 + $0x178] sm:$0xff] %v132_v47  ;;  %v136_v49 = vld [vmem:[%s1294_s0 + $0x188] sm:$0xff]  ;;  %v138_v50 = vld [vmem:[%s1294_s0 + $0x190] sm:$0xff] }
  0x1a   :  { %135 = vst [vmem:[%s1295_s1 + $0x180] sm:$0xff] %v134_v48  ;;  %137 = vst [vmem:[%s1295_s1 + $0x188] sm:$0xff] %v136_v49  ;;  %v140_v51 = vld [vmem:[%s1294_s0 + $0x198] sm:$0xff]  ;;  %v142_v52 = vld [vmem:[%s1294_s0 + $0x1a0] sm:$0xff] }
  0x1b   :  { %139 = vst [vmem:[%s1295_s1 + $0x190] sm:$0xff] %v138_v50  ;;  %v144_v53 = vld [vmem:[%s1294_s0 + $0x1a8] sm:$0xff]  ;;  %141 = vst [vmem:[%s1295_s1 + $0x198] sm:$0xff] %v140_v51  ;;  %v146_v54 = vld [vmem:[%s1294_s0 + $0x1b0] sm:$0xff] }
  0x1c   :  { %143 = vst [vmem:[%s1295_s1 + $0x1a0] sm:$0xff] %v142_v52  ;;  %145 = vst [vmem:[%s1295_s1 + $0x1a8] sm:$0xff] %v144_v53  ;;  %v148_v55 = vld [vmem:[%s1294_s0 + $0x1b8] sm:$0xff]  ;;  %v150_v56 = vld [vmem:[%s1294_s0 + $0x1c0] sm:$0xff] }
  0x1d   :  { %147 = vst [vmem:[%s1295_s1 + $0x1b0] sm:$0xff] %v146_v54  ;;  %149 = vst [vmem:[%s1295_s1 + $0x1b8] sm:$0xff] %v148_v55  ;;  %v152_v57 = vld [vmem:[%s1294_s0 + $0x1c8] sm:$0xff]  ;;  %v154_v58 = vld [vmem:[%s1294_s0 + $0x1d0] sm:$0xff] }
  0x1e   :  { %151 = vst [vmem:[%s1295_s1 + $0x1c0] sm:$0xff] %v150_v56  ;;  %v156_v59 = vld [vmem:[%s1294_s0 + $0x1d8] sm:$0xff]  ;;  %153 = vst [vmem:[%s1295_s1 + $0x1c8] sm:$0xff] %v152_v57  ;;  %v158_v60 = vld [vmem:[%s1294_s0 + $0x1e0] sm:$0xff] }
  0x1f   :  { %155 = vst [vmem:[%s1295_s1 + $0x1d0] sm:$0xff] %v154_v58  ;;  %157 = vst [vmem:[%s1295_s1 + $0x1d8] sm:$0xff] %v156_v59  ;;  %v160_v61 = vld [vmem:[%s1294_s0 + $0x1e8] sm:$0xff]  ;;  %v162_v62 = vld [vmem:[%s1294_s0 + $0x1f0] sm:$0xff] }
  0x20   :  { %159 = vst [vmem:[%s1295_s1 + $0x1e0] sm:$0xff] %v158_v60  ;;  %161 = vst [vmem:[%s1295_s1 + $0x1e8] sm:$0xff] %v160_v61  ;;  %v164_v63 = vld [vmem:[%s1294_s0 + $0x1f8] sm:$0xff]  ;;  %v166_v0 = vld [vmem:[%s1294_s0 + $0x200] sm:$0xff] }
  0x21   :  { %163 = vst [vmem:[%s1295_s1 + $0x1f0] sm:$0xff] %v162_v62  ;;  %v168_v1 = vld [vmem:[%s1294_s0 + $0x208] sm:$0xff]  ;;  %165 = vst [vmem:[%s1295_s1 + $0x1f8] sm:$0xff] %v164_v63  ;;  %v170_v2 = vld [vmem:[%s1294_s0 + $0x210] sm:$0xff] }
  0x22   :  { %167 = vst [vmem:[%s1295_s1 + $0x200] sm:$0xff] %v166_v0  ;;  %169 = vst [vmem:[%s1295_s1 + $0x208] sm:$0xff] %v168_v1  ;;  %v172_v3 = vld [vmem:[%s1294_s0 + $0x218] sm:$0xff]  ;;  %v174_v4 = vld [vmem:[%s1294_s0 + $0x220] sm:$0xff] }
  0x23   :  { %171 = vst [vmem:[%s1295_s1 + $0x210] sm:$0xff] %v170_v2  ;;  %173 = vst [vmem:[%s1295_s1 + $0x218] sm:$0xff] %v172_v3  ;;  %v176_v5 = vld [vmem:[%s1294_s0 + $0x228] sm:$0xff]  ;;  %v178_v6 = vld [vmem:[%s1294_s0 + $0x230] sm:$0xff] }
  0x24   :  { %175 = vst [vmem:[%s1295_s1 + $0x220] sm:$0xff] %v174_v4  ;;  %v180_v7 = vld [vmem:[%s1294_s0 + $0x238] sm:$0xff]  ;;  %177 = vst [vmem:[%s1295_s1 + $0x228] sm:$0xff] %v176_v5  ;;  %v182_v8 = vld [vmem:[%s1294_s0 + $0x240] sm:$0xff] }
  0x25   :  { %179 = vst [vmem:[%s1295_s1 + $0x230] sm:$0xff] %v178_v6  ;;  %181 = vst [vmem:[%s1295_s1 + $0x238] sm:$0xff] %v180_v7  ;;  %v184_v9 = vld [vmem:[%s1294_s0 + $0x248] sm:$0xff]  ;;  %v186_v10 = vld [vmem:[%s1294_s0 + $0x250] sm:$0xff] }
  0x26   :  { %183 = vst [vmem:[%s1295_s1 + $0x240] sm:$0xff] %v182_v8  ;;  %185 = vst [vmem:[%s1295_s1 + $0x248] sm:$0xff] %v184_v9  ;;  %v188_v11 = vld [vmem:[%s1294_s0 + $0x258] sm:$0xff]  ;;  %v190_v12 = vld [vmem:[%s1294_s0 + $0x260] sm:$0xff] }
  0x27   :  { %187 = vst [vmem:[%s1295_s1 + $0x250] sm:$0xff] %v186_v10  ;;  %v192_v13 = vld [vmem:[%s1294_s0 + $0x268] sm:$0xff]  ;;  %189 = vst [vmem:[%s1295_s1 + $0x258] sm:$0xff] %v188_v11  ;;  %v194_v14 = vld [vmem:[%s1294_s0 + $0x270] sm:$0xff] }
  0x28   :  { %191 = vst [vmem:[%s1295_s1 + $0x260] sm:$0xff] %v190_v12  ;;  %193 = vst [vmem:[%s1295_s1 + $0x268] sm:$0xff] %v192_v13  ;;  %v196_v15 = vld [vmem:[%s1294_s0 + $0x278] sm:$0xff]  ;;  %v198_v16 = vld [vmem:[%s1294_s0 + $0x280] sm:$0xff] }
  0x29   :  { %195 = vst [vmem:[%s1295_s1 + $0x270] sm:$0xff] %v194_v14  ;;  %197 = vst [vmem:[%s1295_s1 + $0x278] sm:$0xff] %v196_v15  ;;  %v200_v17 = vld [vmem:[%s1294_s0 + $0x288] sm:$0xff]  ;;  %v202_v18 = vld [vmem:[%s1294_s0 + $0x290] sm:$0xff] }
  0x2a   :  { %199 = vst [vmem:[%s1295_s1 + $0x280] sm:$0xff] %v198_v16  ;;  %v204_v19 = vld [vmem:[%s1294_s0 + $0x298] sm:$0xff]  ;;  %201 = vst [vmem:[%s1295_s1 + $0x288] sm:$0xff] %v200_v17  ;;  %v206_v20 = vld [vmem:[%s1294_s0 + $0x2a0] sm:$0xff] }
  0x2b   :  { %203 = vst [vmem:[%s1295_s1 + $0x290] sm:$0xff] %v202_v18  ;;  %205 = vst [vmem:[%s1295_s1 + $0x298] sm:$0xff] %v204_v19  ;;  %v208_v21 = vld [vmem:[%s1294_s0 + $0x2a8] sm:$0xff]  ;;  %v210_v22 = vld [vmem:[%s1294_s0 + $0x2b0] sm:$0xff] }
  0x2c   :  { %207 = vst [vmem:[%s1295_s1 + $0x2a0] sm:$0xff] %v206_v20  ;;  %209 = vst [vmem:[%s1295_s1 + $0x2a8] sm:$0xff] %v208_v21  ;;  %v212_v23 = vld [vmem:[%s1294_s0 + $0x2b8] sm:$0xff]  ;;  %v214_v24 = vld [vmem:[%s1294_s0 + $0x2c0] sm:$0xff] }
  0x2d   :  { %211 = vst [vmem:[%s1295_s1 + $0x2b0] sm:$0xff] %v210_v22  ;;  %v216_v25 = vld [vmem:[%s1294_s0 + $0x2c8] sm:$0xff]  ;;  %213 = vst [vmem:[%s1295_s1 + $0x2b8] sm:$0xff] %v212_v23  ;;  %v218_v26 = vld [vmem:[%s1294_s0 + $0x2d0] sm:$0xff] }
  0x2e   :  { %215 = vst [vmem:[%s1295_s1 + $0x2c0] sm:$0xff] %v214_v24  ;;  %217 = vst [vmem:[%s1295_s1 + $0x2c8] sm:$0xff] %v216_v25  ;;  %v220_v27 = vld [vmem:[%s1294_s0 + $0x2d8] sm:$0xff]  ;;  %v222_v28 = vld [vmem:[%s1294_s0 + $0x2e0] sm:$0xff] }
  0x2f   :  { %219 = vst [vmem:[%s1295_s1 + $0x2d0] sm:$0xff] %v218_v26  ;;  %221 = vst [vmem:[%s1295_s1 + $0x2d8] sm:$0xff] %v220_v27  ;;  %v224_v29 = vld [vmem:[%s1294_s0 + $0x2e8] sm:$0xff]  ;;  %v226_v30 = vld [vmem:[%s1294_s0 + $0x2f0] sm:$0xff] }
  0x30   :  { %223 = vst [vmem:[%s1295_s1 + $0x2e0] sm:$0xff] %v222_v28  ;;  %v228_v31 = vld [vmem:[%s1294_s0 + $0x2f8] sm:$0xff]  ;;  %225 = vst [vmem:[%s1295_s1 + $0x2e8] sm:$0xff] %v224_v29  ;;  %v230_v32 = vld [vmem:[%s1294_s0 + $0x300] sm:$0xff] }
  0x31   :  { %227 = vst [vmem:[%s1295_s1 + $0x2f0] sm:$0xff] %v226_v30  ;;  %229 = vst [vmem:[%s1295_s1 + $0x2f8] sm:$0xff] %v228_v31  ;;  %v232_v33 = vld [vmem:[%s1294_s0 + $0x308] sm:$0xff]  ;;  %v234_v34 = vld [vmem:[%s1294_s0 + $0x310] sm:$0xff] }
  0x32   :  { %231 = vst [vmem:[%s1295_s1 + $0x300] sm:$0xff] %v230_v32  ;;  %233 = vst [vmem:[%s1295_s1 + $0x308] sm:$0xff] %v232_v33  ;;  %v236_v35 = vld [vmem:[%s1294_s0 + $0x318] sm:$0xff]  ;;  %v238_v36 = vld [vmem:[%s1294_s0 + $0x320] sm:$0xff] }
  0x33   :  { %235 = vst [vmem:[%s1295_s1 + $0x310] sm:$0xff] %v234_v34  ;;  %v240_v37 = vld [vmem:[%s1294_s0 + $0x328] sm:$0xff]  ;;  %237 = vst [vmem:[%s1295_s1 + $0x318] sm:$0xff] %v236_v35  ;;  %v242_v38 = vld [vmem:[%s1294_s0 + $0x330] sm:$0xff] }
  0x34   :  { %239 = vst [vmem:[%s1295_s1 + $0x320] sm:$0xff] %v238_v36  ;;  %241 = vst [vmem:[%s1295_s1 + $0x328] sm:$0xff] %v240_v37  ;;  %v244_v39 = vld [vmem:[%s1294_s0 + $0x338] sm:$0xff]  ;;  %v246_v40 = vld [vmem:[%s1294_s0 + $0x340] sm:$0xff] }
  0x35   :  { %243 = vst [vmem:[%s1295_s1 + $0x330] sm:$0xff] %v242_v38  ;;  %245 = vst [vmem:[%s1295_s1 + $0x338] sm:$0xff] %v244_v39  ;;  %v248_v41 = vld [vmem:[%s1294_s0 + $0x348] sm:$0xff]  ;;  %v250_v42 = vld [vmem:[%s1294_s0 + $0x350] sm:$0xff] }
  0x36   :  { %247 = vst [vmem:[%s1295_s1 + $0x340] sm:$0xff] %v246_v40  ;;  %v252_v43 = vld [vmem:[%s1294_s0 + $0x358] sm:$0xff]  ;;  %249 = vst [vmem:[%s1295_s1 + $0x348] sm:$0xff] %v248_v41  ;;  %v254_v44 = vld [vmem:[%s1294_s0 + $0x360] sm:$0xff] }
  0x37   :  { %251 = vst [vmem:[%s1295_s1 + $0x350] sm:$0xff] %v250_v42  ;;  %253 = vst [vmem:[%s1295_s1 + $0x358] sm:$0xff] %v252_v43  ;;  %v256_v45 = vld [vmem:[%s1294_s0 + $0x368] sm:$0xff]  ;;  %v258_v46 = vld [vmem:[%s1294_s0 + $0x370] sm:$0xff] }
  0x38   :  { %255 = vst [vmem:[%s1295_s1 + $0x360] sm:$0xff] %v254_v44  ;;  %257 = vst [vmem:[%s1295_s1 + $0x368] sm:$0xff] %v256_v45  ;;  %v260_v47 = vld [vmem:[%s1294_s0 + $0x378] sm:$0xff]  ;;  %v262_v48 = vld [vmem:[%s1294_s0 + $0x380] sm:$0xff] }
  0x39   :  { %259 = vst [vmem:[%s1295_s1 + $0x370] sm:$0xff] %v258_v46  ;;  %v264_v49 = vld [vmem:[%s1294_s0 + $0x388] sm:$0xff]  ;;  %261 = vst [vmem:[%s1295_s1 + $0x378] sm:$0xff] %v260_v47  ;;  %v266_v50 = vld [vmem:[%s1294_s0 + $0x390] sm:$0xff] }
  0x3a   :  { %263 = vst [vmem:[%s1295_s1 + $0x380] sm:$0xff] %v262_v48  ;;  %265 = vst [vmem:[%s1295_s1 + $0x388] sm:$0xff] %v264_v49  ;;  %v268_v51 = vld [vmem:[%s1294_s0 + $0x398] sm:$0xff]  ;;  %v270_v52 = vld [vmem:[%s1294_s0 + $0x3a0] sm:$0xff] }
  0x3b   :  { %267 = vst [vmem:[%s1295_s1 + $0x390] sm:$0xff] %v266_v50  ;;  %269 = vst [vmem:[%s1295_s1 + $0x398] sm:$0xff] %v268_v51  ;;  %v272_v53 = vld [vmem:[%s1294_s0 + $0x3a8] sm:$0xff]  ;;  %v274_v54 = vld [vmem:[%s1294_s0 + $0x3b0] sm:$0xff] }
  0x3c   :  { %271 = vst [vmem:[%s1295_s1 + $0x3a0] sm:$0xff] %v270_v52  ;;  %v276_v55 = vld [vmem:[%s1294_s0 + $0x3b8] sm:$0xff]  ;;  %273 = vst [vmem:[%s1295_s1 + $0x3a8] sm:$0xff] %v272_v53  ;;  %v278_v56 = vld [vmem:[%s1294_s0 + $0x3c0] sm:$0xff] }
  0x3d   :  { %275 = vst [vmem:[%s1295_s1 + $0x3b0] sm:$0xff] %v274_v54  ;;  %277 = vst [vmem:[%s1295_s1 + $0x3b8] sm:$0xff] %v276_v55  ;;  %v280_v57 = vld [vmem:[%s1294_s0 + $0x3c8] sm:$0xff]  ;;  %v282_v58 = vld [vmem:[%s1294_s0 + $0x3d0] sm:$0xff] }
  0x3e   :  { %279 = vst [vmem:[%s1295_s1 + $0x3c0] sm:$0xff] %v278_v56  ;;  %281 = vst [vmem:[%s1295_s1 + $0x3c8] sm:$0xff] %v280_v57  ;;  %v284_v59 = vld [vmem:[%s1294_s0 + $0x3d8] sm:$0xff]  ;;  %v286_v60 = vld [vmem:[%s1294_s0 + $0x3e0] sm:$0xff] }
  0x3f   :  { %283 = vst [vmem:[%s1295_s1 + $0x3d0] sm:$0xff] %v282_v58  ;;  %v288_v61 = vld [vmem:[%s1294_s0 + $0x3e8] sm:$0xff]  ;;  %285 = vst [vmem:[%s1295_s1 + $0x3d8] sm:$0xff] %v284_v59  ;;  %v290_v62 = vld [vmem:[%s1294_s0 + $0x3f0] sm:$0xff] }
  0x40   :  { %287 = vst [vmem:[%s1295_s1 + $0x3e0] sm:$0xff] %v286_v60  ;;  %289 = vst [vmem:[%s1295_s1 + $0x3e8] sm:$0xff] %v288_v61  ;;  %v292_v63 = vld [vmem:[%s1294_s0 + $0x3f8] sm:$0xff]  ;;  %v294_v0 = vld [vmem:[%s1294_s0 + $0x400] sm:$0xff] }
  0x41   :  { %291 = vst [vmem:[%s1295_s1 + $0x3f0] sm:$0xff] %v290_v62  ;;  %293 = vst [vmem:[%s1295_s1 + $0x3f8] sm:$0xff] %v292_v63  ;;  %v296_v1 = vld [vmem:[%s1294_s0 + $0x408] sm:$0xff]  ;;  %v298_v2 = vld [vmem:[%s1294_s0 + $0x410] sm:$0xff] }
  0x42   :  { %295 = vst [vmem:[%s1295_s1 + $0x400] sm:$0xff] %v294_v0  ;;  %v300_v3 = vld [vmem:[%s1294_s0 + $0x418] sm:$0xff]  ;;  %297 = vst [vmem:[%s1295_s1 + $0x408] sm:$0xff] %v296_v1  ;;  %v302_v4 = vld [vmem:[%s1294_s0 + $0x420] sm:$0xff] }
  0x43   :  { %299 = vst [vmem:[%s1295_s1 + $0x410] sm:$0xff] %v298_v2  ;;  %301 = vst [vmem:[%s1295_s1 + $0x418] sm:$0xff] %v300_v3  ;;  %v304_v5 = vld [vmem:[%s1294_s0 + $0x428] sm:$0xff]  ;;  %v306_v6 = vld [vmem:[%s1294_s0 + $0x430] sm:$0xff] }
  0x44   :  { %303 = vst [vmem:[%s1295_s1 + $0x420] sm:$0xff] %v302_v4  ;;  %305 = vst [vmem:[%s1295_s1 + $0x428] sm:$0xff] %v304_v5  ;;  %v308_v7 = vld [vmem:[%s1294_s0 + $0x438] sm:$0xff]  ;;  %v310_v8 = vld [vmem:[%s1294_s0 + $0x440] sm:$0xff] }
  0x45   :  { %307 = vst [vmem:[%s1295_s1 + $0x430] sm:$0xff] %v306_v6  ;;  %v312_v9 = vld [vmem:[%s1294_s0 + $0x448] sm:$0xff]  ;;  %309 = vst [vmem:[%s1295_s1 + $0x438] sm:$0xff] %v308_v7  ;;  %v314_v10 = vld [vmem:[%s1294_s0 + $0x450] sm:$0xff] }
  0x46   :  { %311 = vst [vmem:[%s1295_s1 + $0x440] sm:$0xff] %v310_v8  ;;  %313 = vst [vmem:[%s1295_s1 + $0x448] sm:$0xff] %v312_v9  ;;  %v316_v11 = vld [vmem:[%s1294_s0 + $0x458] sm:$0xff]  ;;  %v318_v12 = vld [vmem:[%s1294_s0 + $0x460] sm:$0xff] }
  0x47   :  { %315 = vst [vmem:[%s1295_s1 + $0x450] sm:$0xff] %v314_v10  ;;  %317 = vst [vmem:[%s1295_s1 + $0x458] sm:$0xff] %v316_v11  ;;  %v320_v13 = vld [vmem:[%s1294_s0 + $0x468] sm:$0xff]  ;;  %v322_v14 = vld [vmem:[%s1294_s0 + $0x470] sm:$0xff] }
  0x48   :  { %319 = vst [vmem:[%s1295_s1 + $0x460] sm:$0xff] %v318_v12  ;;  %v324_v15 = vld [vmem:[%s1294_s0 + $0x478] sm:$0xff]  ;;  %321 = vst [vmem:[%s1295_s1 + $0x468] sm:$0xff] %v320_v13  ;;  %v326_v16 = vld [vmem:[%s1294_s0 + $0x480] sm:$0xff] }
  0x49   :  { %323 = vst [vmem:[%s1295_s1 + $0x470] sm:$0xff] %v322_v14  ;;  %325 = vst [vmem:[%s1295_s1 + $0x478] sm:$0xff] %v324_v15  ;;  %v328_v17 = vld [vmem:[%s1294_s0 + $0x488] sm:$0xff]  ;;  %v330_v18 = vld [vmem:[%s1294_s0 + $0x490] sm:$0xff] }
  0x4a   :  { %327 = vst [vmem:[%s1295_s1 + $0x480] sm:$0xff] %v326_v16  ;;  %329 = vst [vmem:[%s1295_s1 + $0x488] sm:$0xff] %v328_v17  ;;  %v332_v19 = vld [vmem:[%s1294_s0 + $0x498] sm:$0xff]  ;;  %v334_v20 = vld [vmem:[%s1294_s0 + $0x4a0] sm:$0xff] }
  0x4b   :  { %331 = vst [vmem:[%s1295_s1 + $0x490] sm:$0xff] %v330_v18  ;;  %v336_v21 = vld [vmem:[%s1294_s0 + $0x4a8] sm:$0xff]  ;;  %333 = vst [vmem:[%s1295_s1 + $0x498] sm:$0xff] %v332_v19  ;;  %v338_v22 = vld [vmem:[%s1294_s0 + $0x4b0] sm:$0xff] }
  0x4c   :  { %335 = vst [vmem:[%s1295_s1 + $0x4a0] sm:$0xff] %v334_v20  ;;  %337 = vst [vmem:[%s1295_s1 + $0x4a8] sm:$0xff] %v336_v21  ;;  %v340_v23 = vld [vmem:[%s1294_s0 + $0x4b8] sm:$0xff] }
  0x4d   :  { %339 = vst [vmem:[%s1295_s1 + $0x4b0] sm:$0xff] %v338_v22  ;;  %341 = vst [vmem:[%s1295_s1 + $0x4b8] sm:$0xff] %v340_v23 }
  0x4e   :  { %349 = vsyncadd [#allocation2], 19456 }
  0x4f   :  { %370 = dma.done.wait [#allocation2], 19456 }
  0x50   :  { %371 = vsyncadd [#allocation2], 4294947840 }
  0x51   :  { %355 = vsyncmov [#allocation2] }
  0x54   :  { %s356_s5 = vpop.sfrf %355 }
  0x55   :  { %p369_p0 = scmp.ne.s32.totalorder %s356_s5, 0 }
  0x57   :  { %360 = shalt.err (%p369_p0)  }

</bundles_post_ra>
